<compile_context>
chip_gen: v5e
topology: v5e:2x2
jax: 0.10.0
libtpu: 0.0.40
codegen_flags: <defaults>
</compile_context>

<pallas_src>
import random as _pyrandom

import jax
import jax.numpy as jnp
from jax.experimental import pallas as pl
from jax.experimental.pallas import tpu as pltpu


# ------------------------------- helpers ----------------------------------- #

def _round_up(n, m):
    return (n + m - 1) // m * m


def _pad_batch(x, bp):
    """Pad axis 1 (batch) of x up to bp rows with zeros."""
    b = x.shape[1]
    if b == bp:
        return x
    pad = [(0, 0)] * x.ndim
    pad[1] = (0, bp - b)
    return jnp.pad(x, pad)


def _uniform(key, shape, scale):
    return jax.random.uniform(key, shape, jnp.float32, -scale, scale)


# ----------------------------- Pallas kernels ------------------------------ #

def _lstm_layer_step(x, layer, w_ref, b_ref, h_ref, c_ref):
    """One layer-step of an LSTM (PyTorch gate order i, f, g, o).

    x        : (Bp, D_in)  f32 input for this layer at this timestep
    w_ref    : (D_in + H, 4H) bf16 fused [W_ih^T ; W_hh^T]
    b_ref    : (1, 4H) f32 fused bias (b_ih + b_hh)
    h_ref/c_ref : (L, Bp, H) f32 resident state refs (read-modify-write)
    """
    H = h_ref.shape[-1]
    h_prev = h_ref[layer]
    c_prev = c_ref[layer]
    # Fused gate matmul: one MXU dot per layer-step (bf16 in, f32 accumulate).
    xh = jnp.concatenate([x, h_prev], axis=-1).astype(w_ref.dtype)
    gates = (jnp.dot(xh, w_ref[...], preferred_element_type=jnp.float32)
             + b_ref[...])
    i = jax.nn.sigmoid(gates[:, 0 * H:1 * H])
    f = jax.nn.sigmoid(gates[:, 1 * H:2 * H])
    g = jnp.tanh(gates[:, 2 * H:3 * H])
    o = jax.nn.sigmoid(gates[:, 3 * H:4 * H])
    c_new = f * c_prev + i * g
    h_new = o * jnp.tanh(c_new)
    h_ref[layer] = h_new
    c_ref[layer] = c_new
    return h_new


def _make_encoder_kernel(n_layers):
    """Fused multi-layer LSTM over the whole source sequence (grid = time)."""

    def kernel(emb_ref, *rest):
        layer_refs = rest[:2 * n_layers]
        h_ref = rest[2 * n_layers]          # (L, Bp, H) output, resident
        c_ref = rest[2 * n_layers + 1]      # (L, Bp, H) output, resident
        t = pl.program_id(0)

        @pl.when(t == 0)
        def _():
            h_ref[...] = jnp.zeros_like(h_ref)
            c_ref[...] = jnp.zeros_like(c_ref)

        x = emb_ref[0]                      # (Bp, E)
        for l in range(n_layers):
            x = _lstm_layer_step(x, l, layer_refs[2 * l], layer_refs[2 * l + 1],
                                 h_ref, c_ref)

    return kernel


def _make_decoder_kernel(n_layers):
    """Fused multi-layer LSTM + Linear head over the decode sequence."""

    def kernel(emb_ref, h0_ref, c0_ref, *rest):
        layer_refs = rest[:2 * n_layers]
        head_w_ref = rest[2 * n_layers]       # (H, V) bf16
        head_b_ref = rest[2 * n_layers + 1]   # (1, V) f32
        pred_ref = rest[2 * n_layers + 2]     # (1, Bp, V) per-step output
        h_ref = rest[2 * n_layers + 3]        # (L, Bp, H) resident state/output
        c_ref = rest[2 * n_layers + 4]        # (L, Bp, H) resident state/output
        t = pl.program_id(0)

        @pl.when(t == 0)
        def _():
            h_ref[...] = h0_ref[...]
            c_ref[...] = c0_ref[...]

        x = emb_ref[0]                        # (Bp, E)
        for l in range(n_layers):
            x = _lstm_layer_step(x, l, layer_refs[2 * l], layer_refs[2 * l + 1],
                                 h_ref, c_ref)
        # Fused vocab projection on the top-layer hidden state.
        pred_ref[0] = (jnp.dot(x.astype(head_w_ref.dtype), head_w_ref[...],
                               preferred_element_type=jnp.float32)
                       + head_b_ref[...])

    return kernel


# ----------------------------- pallas_call wrappers ------------------------ #

def _run_encoder(enc_layers, emb):
    """emb: (S, Bp, E) f32 -> (h_n, c_n) each (L, Bp, H) f32."""
    T, Bp, E = emb.shape
    L = len(enc_layers)
    H = enc_layers[0][0].shape[1] // 4

    in_specs = [pl.BlockSpec((1, Bp, E), lambda t: (t, 0, 0))]
    args = [emb]
    for w, b in enc_layers:
        args += [w, b]
        in_specs += [pl.BlockSpec(w.shape, lambda t: (0, 0)),
                     pl.BlockSpec(b.shape, lambda t: (0, 0))]

    out_shape = (jax.ShapeDtypeStruct((L, Bp, H), jnp.float32),
                 jax.ShapeDtypeStruct((L, Bp, H), jnp.float32))
    out_specs = (pl.BlockSpec((L, Bp, H), lambda t: (0, 0, 0)),
                 pl.BlockSpec((L, Bp, H), lambda t: (0, 0, 0)))

    return pl.pallas_call(
        _make_encoder_kernel(L),
        grid=(T,),
        in_specs=in_specs,
        out_specs=out_specs,
        out_shape=out_shape,
        compiler_params=pltpu.CompilerParams(
            dimension_semantics=("arbitrary",)),
    )(*args)


def _run_decoder(dec_layers, head_w, head_b, emb, h0, c0):
    """emb: (T, Bp, E), h0/c0: (L, Bp, H) -> (preds (T, Bp, V), h_n, c_n)."""
    T, Bp, E = emb.shape
    L, _, H = h0.shape
    V = head_w.shape[1]

    in_specs = [pl.BlockSpec((1, Bp, E), lambda t: (t, 0, 0)),
                pl.BlockSpec((L, Bp, H), lambda t: (0, 0, 0)),
                pl.BlockSpec((L, Bp, H), lambda t: (0, 0, 0))]
    args = [emb, h0, c0]
    for w, b in dec_layers:
        args += [w, b]
        in_specs += [pl.BlockSpec(w.shape, lambda t: (0, 0)),
                     pl.BlockSpec(b.shape, lambda t: (0, 0))]
    args += [head_w, head_b]
    in_specs += [pl.BlockSpec(head_w.shape, lambda t: (0, 0)),
                 pl.BlockSpec(head_b.shape, lambda t: (0, 0))]

    out_shape = (jax.ShapeDtypeStruct((T, Bp, V), jnp.float32),
                 jax.ShapeDtypeStruct((L, Bp, H), jnp.float32),
                 jax.ShapeDtypeStruct((L, Bp, H), jnp.float32))
    out_specs = (pl.BlockSpec((1, Bp, V), lambda t: (t, 0, 0)),
                 pl.BlockSpec((L, Bp, H), lambda t: (0, 0, 0)),
                 pl.BlockSpec((L, Bp, H), lambda t: (0, 0, 0)))

    return pl.pallas_call(
        _make_decoder_kernel(L),
        grid=(T,),
        in_specs=in_specs,
        out_specs=out_specs,
        out_shape=out_shape,
        compiler_params=pltpu.CompilerParams(
            dimension_semantics=("arbitrary",)),
    )(*args)


# ------------------------------ model forward ------------------------------ #

@jax.jit
def _forward_teacher_forced(params, src, trg):
    """Fully fused path: encoder + teacher-forced decoder, each one pallas_call."""
    max_len, batch = trg.shape
    V = params["dec_out_b"].shape[-1]
    bp = _round_up(batch, 8)

    # Encoder: one batched embedding gather + one fused sequence kernel.
    src_emb = _pad_batch(jnp.take(params["src_vocab"], src, axis=0), bp)
    h_n, c_n = _run_encoder(params["enc_layers"], src_emb)

    # Decoder: inputs are trg[:-1] under full teacher forcing -> one gather.
    dec_emb = _pad_batch(jnp.take(params["target_vocab"], trg[:-1], axis=0), bp)
    preds, h_n, c_n = _run_decoder(params["dec_layers"], params["dec_out_w_t"],
                                   params["dec_out_b"], dec_emb, h_n, c_n)

    outputs = jnp.concatenate(
        [jnp.zeros((1, bp, V), jnp.float32), preds], axis=0)  # outputs[0] = 0
    return outputs[:, :batch], h_n[:, :batch]


def _forward_stepwise(params, src, trg, tf_flags):
    """Fallback for partial teacher forcing (argmax feedback between steps)."""
    max_len, batch = trg.shape
    V = params["dec_out_b"].shape[-1]
    bp = _round_up(batch, 8)

    src_emb = _pad_batch(jnp.take(params["src_vocab"], src, axis=0), bp)
    hs, cs = _run_encoder(params["enc_layers"], src_emb)

    outputs = [jnp.zeros((batch, V), jnp.float32)]
    inp = trg[0]
    for t in range(1, max_len):
        emb = jnp.take(params["target_vocab"], inp, axis=0)[None]   # (1, B, E)
        emb = _pad_batch(emb, bp)
        preds, hs, cs = _run_decoder(params["dec_layers"],
                                     params["dec_out_w_t"],
                                     params["dec_out_b"], emb, hs, cs)
        pred = preds[0, :batch]
        outputs.append(pred)
        if tf_flags[t - 1]:
            inp = trg[t]
        else:
            # argmax only computed when its result is actually consumed
            inp = jnp.argmax(pred, axis=1).astype(trg.dtype)
    return jnp.stack(outputs, 0), hs[:, :batch]


def seq2seq_forward(params, src, trg, teacher_forcing_ratio=1.0):
    """src:(src_len, B) int32, trg:(max_len, B) int32.

    Returns (outputs (max_len, B, V), hidden (L, B, H)), matching the PyTorch
    Seq2Seq.forward semantics (outputs[0] stays zeros, eval-mode dropout no-op).
    """
    max_len, _ = trg.shape
    _pyrandom.seed(0)  # deterministic teacher-forcing decisions
    tf_flags = [_pyrandom.random() < teacher_forcing_ratio
                for _ in range(1, max_len)]
    # Only decisions at t = 1 .. max_len-2 influence decoder inputs.
    if all(tf_flags[:max(0, max_len - 2)]):
        return _forward_teacher_forced(params, src, trg)
    return _forward_stepwise(params, src, trg, tf_flags)


# ------------------------------ param init --------------------------------- #

def init_params(key, *, src_vocab_size, target_vocab_size, emb_dim, hid_dim,
                n_layers):
    ks = iter(jax.random.split(key, 4 + 8 * n_layers))
    scale = 1.0 / float(hid_dim) ** 0.5

    def lstm_layer(d_in):
        # Fused, pre-transposed weight [W_ih^T ; W_hh^T]: (d_in + H, 4H) bf16.
        wih_t = _uniform(next(ks), (d_in, 4 * hid_dim), scale)
        whh_t = _uniform(next(ks), (hid_dim, 4 * hid_dim), scale)
        b = (_uniform(next(ks), (1, 4 * hid_dim), scale)
             + _uniform(next(ks), (1, 4 * hid_dim), scale))
        w = jnp.concatenate([wih_t, whh_t], axis=0).astype(jnp.bfloat16)
        return (w, b)

    enc_layers = [lstm_layer(emb_dim if l == 0 else hid_dim)
                  for l in range(n_layers)]
    dec_layers = [lstm_layer(emb_dim if l == 0 else hid_dim)
                  for l in range(n_layers)]

    return {
        # frozen embedding tables (the numpy vocab matrices in the PyTorch code)
        "src_vocab": jax.random.normal(next(ks), (src_vocab_size, emb_dim),
                                       jnp.float32),
        "target_vocab": jax.random.normal(next(ks), (target_vocab_size, emb_dim),
                                          jnp.float32),
        "enc_layers": enc_layers,
        "dec_layers": dec_layers,
        # decoder output Linear, stored transposed: (H, V) bf16 + f32 bias
        "dec_out_w_t": _uniform(next(ks), (hid_dim, target_vocab_size),
                                scale).astype(jnp.bfloat16),
        "dec_out_b": _uniform(next(ks), (1, target_vocab_size), scale),
    }


# --------------------------------- main ------------------------------------ #

if __name__ == "__main__":
    SRC_VOCAB_SIZE = 32
    TGT_VOCAB_SIZE = 32
    EMB_DIM = 16
    HID_DIM = 32
    N_LAYERS = 2
    SRC_LEN = 8
    MAX_LEN = 8
    BATCH = 2

    key = jax.random.PRNGKey(0)
    kp, ksrc, ktrg = jax.random.split(key, 3)
    params = init_params(kp,
                         src_vocab_size=SRC_VOCAB_SIZE,
                         target_vocab_size=TGT_VOCAB_SIZE,
                         emb_dim=EMB_DIM,
                         hid_dim=HID_DIM,
                         n_layers=N_LAYERS)

    src = jax.random.randint(ksrc, (SRC_LEN, BATCH), 0, SRC_VOCAB_SIZE,
                             dtype=jnp.int32)
    trg = jax.random.randint(ktrg, (MAX_LEN, BATCH), 0, TGT_VOCAB_SIZE,
                             dtype=jnp.int32)

    outputs, hidden = seq2seq_forward(params, src, trg,
                                      teacher_forcing_ratio=1.0)
    jax.block_until_ready((outputs, hidden))

    assert outputs.shape == (MAX_LEN, BATCH, TGT_VOCAB_SIZE)
    assert hidden.shape == (N_LAYERS, BATCH, HID_DIM)
    assert bool(jnp.all(jnp.isfinite(outputs)))
    print("KERNEL_OK")
</pallas_src>

<mosaic_0001>
module attributes {stable_mosaic.version = 11 : i64} {
  func.func @kernel(%arg0: i32, %arg1: memref<1x8x16xf32, #tpu.memory_space<vmem>>, %arg2: memref<2x8x32xf32, #tpu.memory_space<vmem>>, %arg3: memref<2x8x32xf32, #tpu.memory_space<vmem>>, %arg4: memref<48x128xbf16, #tpu.memory_space<vmem>>, %arg5: memref<1x128xf32, #tpu.memory_space<vmem>>, %arg6: memref<64x128xbf16, #tpu.memory_space<vmem>>, %arg7: memref<1x128xf32, #tpu.memory_space<vmem>>, %arg8: memref<32x32xbf16, #tpu.memory_space<vmem>>, %arg9: memref<1x32xf32, #tpu.memory_space<vmem>>, %arg10: memref<1x8x32xf32, #tpu.memory_space<vmem>>, %arg11: memref<2x8x32xf32, #tpu.memory_space<vmem>>, %arg12: memref<2x8x32xf32, #tpu.memory_space<vmem>>) attributes {dimension_semantics = [#tpu.dimension_semantics<arbitrary>], iteration_bounds = array<i64: 7>, scalar_prefetch = 0 : i64, scratch_operands = 0 : i64, tpu.core_type = #tpu.core_type<tc>, window_params = [{transform_indices = @transform_0, window_bounds = array<i64: 1, 8, 16>}, {pipeline_mode = #tpu.pipeline_mode<synchronous>, transform_indices = @transform_1, window_bounds = array<i64: 2, 8, 32>}, {pipeline_mode = #tpu.pipeline_mode<synchronous>, transform_indices = @transform_2, window_bounds = array<i64: 2, 8, 32>}, {pipeline_mode = #tpu.pipeline_mode<synchronous>, transform_indices = @transform_3, window_bounds = array<i64: 48, 128>}, {pipeline_mode = #tpu.pipeline_mode<synchronous>, transform_indices = @transform_4, window_bounds = array<i64: 1, 128>}, {pipeline_mode = #tpu.pipeline_mode<synchronous>, transform_indices = @transform_5, window_bounds = array<i64: 64, 128>}, {pipeline_mode = #tpu.pipeline_mode<synchronous>, transform_indices = @transform_6, window_bounds = array<i64: 1, 128>}, {pipeline_mode = #tpu.pipeline_mode<synchronous>, transform_indices = @transform_7, window_bounds = array<i64: 32, 32>}, {pipeline_mode = #tpu.pipeline_mode<synchronous>, transform_indices = @transform_8, window_bounds = array<i64: 1, 32>}, {transform_indices = @transform_9, window_bounds = array<i64: 1, 8, 32>}, {pipeline_mode = #tpu.pipeline_mode<synchronous>, transform_indices = @transform_10, window_bounds = array<i64: 2, 8, 32>}, {pipeline_mode = #tpu.pipeline_mode<synchronous>, transform_indices = @transform_11, window_bounds = array<i64: 2, 8, 32>}]} {
    %c0_i32 = arith.constant 0 : i32
    %0 = arith.cmpi eq, %arg0, %c0_i32 : i32
    %1 = arith.extui %0 : i1 to i32
    %c0_i32_0 = arith.constant 0 : i32
    %2 = arith.cmpi ne, %1, %c0_i32_0 : i32
    scf.if %2 {
      %c0_49 = arith.constant 0 : index
      %c0_50 = arith.constant 0 : index
      %c0_51 = arith.constant 0 : index
      %98 = vector.load %arg2[%c0_49, %c0_50, %c0_51] : memref<2x8x32xf32, #tpu.memory_space<vmem>>, vector<2x8x32xf32>
      %c0_52 = arith.constant 0 : index
      %c0_53 = arith.constant 0 : index
      %c0_54 = arith.constant 0 : index
      %99 = vector.load %arg11[%c0_52, %c0_53, %c0_54] : memref<2x8x32xf32, #tpu.memory_space<vmem>>, vector<2x8x32xf32>
      tpu.vector_store %arg11[%c0_52, %c0_53, %c0_54], %98 {strides = array<i32>} : memref<2x8x32xf32, #tpu.memory_space<vmem>>, vector<2x8x32xf32>,
      %c0_55 = arith.constant 0 : index
      %c0_56 = arith.constant 0 : index
      %c0_57 = arith.constant 0 : index
      %100 = vector.load %arg3[%c0_55, %c0_56, %c0_57] : memref<2x8x32xf32, #tpu.memory_space<vmem>>, vector<2x8x32xf32>
      %c0_58 = arith.constant 0 : index
      %c0_59 = arith.constant 0 : index
      %c0_60 = arith.constant 0 : index
      %101 = vector.load %arg12[%c0_58, %c0_59, %c0_60] : memref<2x8x32xf32, #tpu.memory_space<vmem>>, vector<2x8x32xf32>
      tpu.vector_store %arg12[%c0_58, %c0_59, %c0_60], %100 {strides = array<i32>} : memref<2x8x32xf32, #tpu.memory_space<vmem>>, vector<2x8x32xf32>,
    } else {
    }
    %c0 = arith.constant 0 : index
    %c0_1 = arith.constant 0 : index
    %c0_2 = arith.constant 0 : index
    %3 = vector.load %arg1[%c0, %c0_1, %c0_2] : memref<1x8x16xf32, #tpu.memory_space<vmem>>, vector<1x8x16xf32>
    %4 = vector.shape_cast %3 : vector<1x8x16xf32> to vector<8x16xf32>
    %c0_3 = arith.constant 0 : index
    %c0_4 = arith.constant 0 : index
    %c0_5 = arith.constant 0 : index
    %5 = vector.load %arg11[%c0_3, %c0_4, %c0_5] : memref<2x8x32xf32, #tpu.memory_space<vmem>>, vector<1x8x32xf32>
    %6 = vector.shape_cast %5 : vector<1x8x32xf32> to vector<8x32xf32>
    %c0_6 = arith.constant 0 : index
    %c0_7 = arith.constant 0 : index
    %c0_8 = arith.constant 0 : index
    %7 = vector.load %arg12[%c0_6, %c0_7, %c0_8] : memref<2x8x32xf32, #tpu.memory_space<vmem>>, vector<1x8x32xf32>
    %8 = vector.shape_cast %7 : vector<1x8x32xf32> to vector<8x32xf32>
    %9 = tpu.concatenate %4, %6 in 1 : vector<8x16xf32>, vector<8x32xf32> -> vector<8x48xf32>
    %10 = arith.truncf %9 : vector<8x48xf32> to vector<8x48xbf16>
    %c0_9 = arith.constant 0 : index
    %c0_10 = arith.constant 0 : index
    %11 = vector.load %arg4[%c0_9, %c0_10] : memref<48x128xbf16, #tpu.memory_space<vmem>>, vector<48x128xbf16>
    %cst = arith.constant dense<0.000000e+00> : vector<8x128xf32>
    %12 = tpu.matmul %10, %11, %cst {dimension_numbers = #tpu.dot_dimension_numbers<[1], [0], [0], [1], [0, 0, 1, 1], [], []>} : vector<8x48xbf16>, vector<48x128xbf16>, vector<8x128xf32> -> vector<8x128xf32>
    %c0_11 = arith.constant 0 : index
    %c0_12 = arith.constant 0 : index
    %13 = vector.load %arg5[%c0_11, %c0_12] : memref<1x128xf32, #tpu.memory_space<vmem>>, vector<1x128xf32>
    %14 = vector.broadcast %13 : vector<1x128xf32> to vector<8x128xf32>
    %15 = arith.addf %12, %14 : vector<8x128xf32>
    %16 = vector.extract_strided_slice %15 {offsets = [0, 0], sizes = [8, 32], strides = [1, 1]} : vector<8x128xf32> to vector<8x32xf32>
    %17 = arith.negf %16 : vector<8x32xf32>
    %18 = math.exp %17 : vector<8x32xf32>
    %cst_13 = arith.constant 1.000000e+00 : f32
    %19 = vector.broadcast %cst_13 : f32 to vector<8x32xf32>
    %20 = arith.addf %19, %18 : vector<8x32xf32>
    %21 = arith.divf %19, %20 : vector<8x32xf32>
    %22 = vector.extract_strided_slice %15 {offsets = [0, 32], sizes = [8, 32], strides = [1, 1]} : vector<8x128xf32> to vector<8x32xf32>
    %23 = arith.negf %22 : vector<8x32xf32>
    %24 = math.exp %23 : vector<8x32xf32>
    %cst_14 = arith.constant 1.000000e+00 : f32
    %25 = vector.broadcast %cst_14 : f32 to vector<8x32xf32>
    %26 = arith.addf %25, %24 : vector<8x32xf32>
    %27 = arith.divf %25, %26 : vector<8x32xf32>
    %28 = vector.extract_strided_slice %15 {offsets = [0, 64], sizes = [8, 32], strides = [1, 1]} : vector<8x128xf32> to vector<8x32xf32>
    %29 = math.tanh %28 : vector<8x32xf32>
    %30 = vector.extract_strided_slice %15 {offsets = [0, 96], sizes = [8, 32], strides = [1, 1]} : vector<8x128xf32> to vector<8x32xf32>
    %31 = arith.negf %30 : vector<8x32xf32>
    %32 = math.exp %31 : vector<8x32xf32>
    %cst_15 = arith.constant 1.000000e+00 : f32
    %33 = vector.broadcast %cst_15 : f32 to vector<8x32xf32>
    %34 = arith.addf %33, %32 : vector<8x32xf32>
    %35 = arith.divf %33, %34 : vector<8x32xf32>
    %36 = arith.mulf %27, %8 : vector<8x32xf32>
    %37 = arith.mulf %21, %29 : vector<8x32xf32>
    %38 = arith.addf %36, %37 : vector<8x32xf32>
    %39 = math.tanh %38 : vector<8x32xf32>
    %40 = arith.mulf %35, %39 : vector<8x32xf32>
    %c0_16 = arith.constant 0 : index
    %c0_17 = arith.constant 0 : index
    %c0_18 = arith.constant 0 : index
    %41 = vector.load %arg11[%c0_16, %c0_17, %c0_18] : memref<2x8x32xf32, #tpu.memory_space<vmem>>, vector<1x8x32xf32>
    %42 = vector.shape_cast %41 : vector<1x8x32xf32> to vector<8x32xf32>
    %43 = vector.shape_cast %40 : vector<8x32xf32> to vector<1x8x32xf32>
    tpu.vector_store %arg11[%c0_16, %c0_17, %c0_18], %43 {strides = array<i32>} : memref<2x8x32xf32, #tpu.memory_space<vmem>>, vector<1x8x32xf32>,
    %c0_19 = arith.constant 0 : index
    %c0_20 = arith.constant 0 : index
    %c0_21 = arith.constant 0 : index
    %44 = vector.load %arg12[%c0_19, %c0_20, %c0_21] : memref<2x8x32xf32, #tpu.memory_space<vmem>>, vector<1x8x32xf32>
    %45 = vector.shape_cast %44 : vector<1x8x32xf32> to vector<8x32xf32>
    %46 = vector.shape_cast %38 : vector<8x32xf32> to vector<1x8x32xf32>
    tpu.vector_store %arg12[%c0_19, %c0_20, %c0_21], %46 {strides = array<i32>} : memref<2x8x32xf32, #tpu.memory_space<vmem>>, vector<1x8x32xf32>,
    %c1 = arith.constant 1 : index
    %c0_22 = arith.constant 0 : index
    %c0_23 = arith.constant 0 : index
    %47 = vector.load %arg11[%c1, %c0_22, %c0_23] : memref<2x8x32xf32, #tpu.memory_space<vmem>>, vector<1x8x32xf32>
    %48 = vector.shape_cast %47 : vector<1x8x32xf32> to vector<8x32xf32>
    %c1_24 = arith.constant 1 : index
    %c0_25 = arith.constant 0 : index
    %c0_26 = arith.constant 0 : index
    %49 = vector.load %arg12[%c1_24, %c0_25, %c0_26] : memref<2x8x32xf32, #tpu.memory_space<vmem>>, vector<1x8x32xf32>
    %50 = vector.shape_cast %49 : vector<1x8x32xf32> to vector<8x32xf32>
    %51 = tpu.concatenate %40, %48 in 1 : vector<8x32xf32>, vector<8x32xf32> -> vector<8x64xf32>
    %52 = arith.truncf %51 : vector<8x64xf32> to vector<8x64xbf16>
    %c0_27 = arith.constant 0 : index
    %c0_28 = arith.constant 0 : index
    %53 = vector.load %arg6[%c0_27, %c0_28] : memref<64x128xbf16, #tpu.memory_space<vmem>>, vector<64x128xbf16>
    %cst_29 = arith.constant dense<0.000000e+00> : vector<8x128xf32>
    %54 = tpu.matmul %52, %53, %cst_29 {dimension_numbers = #tpu.dot_dimension_numbers<[1], [0], [0], [1], [0, 0, 1, 1], [], []>} : vector<8x64xbf16>, vector<64x128xbf16>, vector<8x128xf32> -> vector<8x128xf32>
    %c0_30 = arith.constant 0 : index
    %c0_31 = arith.constant 0 : index
    %55 = vector.load %arg7[%c0_30, %c0_31] : memref<1x128xf32, #tpu.memory_space<vmem>>, vector<1x128xf32>
    %56 = vector.broadcast %55 : vector<1x128xf32> to vector<8x128xf32>
    %57 = arith.addf %54, %56 : vector<8x128xf32>
    %58 = vector.extract_strided_slice %57 {offsets = [0, 0], sizes = [8, 32], strides = [1, 1]} : vector<8x128xf32> to vector<8x32xf32>
    %59 = arith.negf %58 : vector<8x32xf32>
    %60 = math.exp %59 : vector<8x32xf32>
    %cst_32 = arith.constant 1.000000e+00 : f32
    %61 = vector.broadcast %cst_32 : f32 to vector<8x32xf32>
    %62 = arith.addf %61, %60 : vector<8x32xf32>
    %63 = arith.divf %61, %62 : vector<8x32xf32>
    %64 = vector.extract_strided_slice %57 {offsets = [0, 32], sizes = [8, 32], strides = [1, 1]} : vector<8x128xf32> to vector<8x32xf32>
    %65 = arith.negf %64 : vector<8x32xf32>
    %66 = math.exp %65 : vector<8x32xf32>
    %cst_33 = arith.constant 1.000000e+00 : f32
    %67 = vector.broadcast %cst_33 : f32 to vector<8x32xf32>
    %68 = arith.addf %67, %66 : vector<8x32xf32>
    %69 = arith.divf %67, %68 : vector<8x32xf32>
    %70 = vector.extract_strided_slice %57 {offsets = [0, 64], sizes = [8, 32], strides = [1, 1]} : vector<8x128xf32> to vector<8x32xf32>
    %71 = math.tanh %70 : vector<8x32xf32>
    %72 = vector.extract_strided_slice %57 {offsets = [0, 96], sizes = [8, 32], strides = [1, 1]} : vector<8x128xf32> to vector<8x32xf32>
    %73 = arith.negf %72 : vector<8x32xf32>
    %74 = math.exp %73 : vector<8x32xf32>
    %cst_34 = arith.constant 1.000000e+00 : f32
    %75 = vector.broadcast %cst_34 : f32 to vector<8x32xf32>
    %76 = arith.addf %75, %74 : vector<8x32xf32>
    %77 = arith.divf %75, %76 : vector<8x32xf32>
    %78 = arith.mulf %69, %50 : vector<8x32xf32>
    %79 = arith.mulf %63, %71 : vector<8x32xf32>
    %80 = arith.addf %78, %79 : vector<8x32xf32>
    %81 = math.tanh %80 : vector<8x32xf32>
    %82 = arith.mulf %77, %81 : vector<8x32xf32>
    %c1_35 = arith.constant 1 : index
    %c0_36 = arith.constant 0 : index
    %c0_37 = arith.constant 0 : index
    %83 = vector.load %arg11[%c1_35, %c0_36, %c0_37] : memref<2x8x32xf32, #tpu.memory_space<vmem>>, vector<1x8x32xf32>
    %84 = vector.shape_cast %83 : vector<1x8x32xf32> to vector<8x32xf32>
    %85 = vector.shape_cast %82 : vector<8x32xf32> to vector<1x8x32xf32>
    tpu.vector_store %arg11[%c1_35, %c0_36, %c0_37], %85 {strides = array<i32>} : memref<2x8x32xf32, #tpu.memory_space<vmem>>, vector<1x8x32xf32>,
    %c1_38 = arith.constant 1 : index
    %c0_39 = arith.constant 0 : index
    %c0_40 = arith.constant 0 : index
    %86 = vector.load %arg12[%c1_38, %c0_39, %c0_40] : memref<2x8x32xf32, #tpu.memory_space<vmem>>, vector<1x8x32xf32>
    %87 = vector.shape_cast %86 : vector<1x8x32xf32> to vector<8x32xf32>
    %88 = vector.shape_cast %80 : vector<8x32xf32> to vector<1x8x32xf32>
    tpu.vector_store %arg12[%c1_38, %c0_39, %c0_40], %88 {strides = array<i32>} : memref<2x8x32xf32, #tpu.memory_space<vmem>>, vector<1x8x32xf32>,
    %89 = arith.truncf %82 : vector<8x32xf32> to vector<8x32xbf16>
    %c0_41 = arith.constant 0 : index
    %c0_42 = arith.constant 0 : index
    %90 = vector.load %arg8[%c0_41, %c0_42] : memref<32x32xbf16, #tpu.memory_space<vmem>>, vector<32x32xbf16>
    %cst_43 = arith.constant dense<0.000000e+00> : vector<8x32xf32>
    %91 = tpu.matmul %89, %90, %cst_43 {dimension_numbers = #tpu.dot_dimension_numbers<[1], [0], [0], [1], [0, 0, 1, 1], [], []>} : vector<8x32xbf16>, vector<32x32xbf16>, vector<8x32xf32> -> vector<8x32xf32>
    %c0_44 = arith.constant 0 : index
    %c0_45 = arith.constant 0 : index
    %92 = vector.load %arg9[%c0_44, %c0_45] : memref<1x32xf32, #tpu.memory_space<vmem>>, vector<1x32xf32>
    %93 = vector.broadcast %92 : vector<1x32xf32> to vector<8x32xf32>
    %94 = arith.addf %91, %93 : vector<8x32xf32>
    %c0_46 = arith.constant 0 : index
    %c0_47 = arith.constant 0 : index
    %c0_48 = arith.constant 0 : index
    %95 = vector.load %arg10[%c0_46, %c0_47, %c0_48] : memref<1x8x32xf32, #tpu.memory_space<vmem>>, vector<1x8x32xf32>
    %96 = vector.shape_cast %95 : vector<1x8x32xf32> to vector<8x32xf32>
    %97 = vector.shape_cast %94 : vector<8x32xf32> to vector<1x8x32xf32>
    tpu.vector_store %arg10[%c0_46, %c0_47, %c0_48], %97 {strides = array<i32>} : memref<1x8x32xf32, #tpu.memory_space<vmem>>, vector<1x8x32xf32>,
    return
  }
  func.func @transform_0(%arg0: i32) -> (i32, i32, i32) {
    %c0_i32 = arith.constant 0 : i32
    %c0_i32_0 = arith.constant 0 : i32
    %c0_i32_1 = arith.constant 0 : i32
    return %arg0, %c0_i32, %c0_i32_0 : i32, i32, i32
  }
  func.func @transform_1(%arg0: i32) -> (i32, i32, i32) {
    %c0_i32 = arith.constant 0 : i32
    %c0_i32_0 = arith.constant 0 : i32
    %c0_i32_1 = arith.constant 0 : i32
    %c0_i32_2 = arith.constant 0 : i32
    return %c0_i32, %c0_i32_0, %c0_i32_1 : i32, i32, i32
  }
  func.func @transform_2(%arg0: i32) -> (i32, i32, i32) {
    %c0_i32 = arith.constant 0 : i32
    %c0_i32_0 = arith.constant 0 : i32
    %c0_i32_1 = arith.constant 0 : i32
    %c0_i32_2 = arith.constant 0 : i32
    return %c0_i32, %c0_i32_0, %c0_i32_1 : i32, i32, i32
  }
  func.func @transform_3(%arg0: i32) -> (i32, i32) {
    %c0_i32 = arith.constant 0 : i32
    %c0_i32_0 = arith.constant 0 : i32
    %c0_i32_1 = arith.constant 0 : i32
    return %c0_i32, %c0_i32_0 : i32, i32
  }
  func.func @transform_4(%arg0: i32) -> (i32, i32) {
    %c0_i32 = arith.constant 0 : i32
    %c0_i32_0 = arith.constant 0 : i32
    %c0_i32_1 = arith.constant 0 : i32
    return %c0_i32, %c0_i32_0 : i32, i32
  }
  func.func @transform_5(%arg0: i32) -> (i32, i32) {
    %c0_i32 = arith.constant 0 : i32
    %c0_i32_0 = arith.constant 0 : i32
    %c0_i32_1 = arith.constant 0 : i32
    return %c0_i32, %c0_i32_0 : i32, i32
  }
  func.func @transform_6(%arg0: i32) -> (i32, i32) {
    %c0_i32 = arith.constant 0 : i32
    %c0_i32_0 = arith.constant 0 : i32
    %c0_i32_1 = arith.constant 0 : i32
    return %c0_i32, %c0_i32_0 : i32, i32
  }
  func.func @transform_7(%arg0: i32) -> (i32, i32) {
    %c0_i32 = arith.constant 0 : i32
    %c0_i32_0 = arith.constant 0 : i32
    %c0_i32_1 = arith.constant 0 : i32
    return %c0_i32, %c0_i32_0 : i32, i32
  }
  func.func @transform_8(%arg0: i32) -> (i32, i32) {
    %c0_i32 = arith.constant 0 : i32
    %c0_i32_0 = arith.constant 0 : i32
    %c0_i32_1 = arith.constant 0 : i32
    return %c0_i32, %c0_i32_0 : i32, i32
  }
  func.func @transform_9(%arg0: i32) -> (i32, i32, i32) {
    %c0_i32 = arith.constant 0 : i32
    %c0_i32_0 = arith.constant 0 : i32
    %c0_i32_1 = arith.constant 0 : i32
    return %arg0, %c0_i32, %c0_i32_0 : i32, i32, i32
  }
  func.func @transform_10(%arg0: i32) -> (i32, i32, i32) {
    %c0_i32 = arith.constant 0 : i32
    %c0_i32_0 = arith.constant 0 : i32
    %c0_i32_1 = arith.constant 0 : i32
    %c0_i32_2 = arith.constant 0 : i32
    return %c0_i32, %c0_i32_0, %c0_i32_1 : i32, i32, i32
  }
  func.func @transform_11(%arg0: i32) -> (i32, i32, i32) {
    %c0_i32 = arith.constant 0 : i32
    %c0_i32_0 = arith.constant 0 : i32
    %c0_i32_1 = arith.constant 0 : i32
    %c0_i32_2 = arith.constant 0 : i32
    return %c0_i32, %c0_i32_0, %c0_i32_1 : i32, i32, i32
  }
}

module attributes {stable_mosaic.version = 11 : i64} {
  func.func @kernel(%arg0: i32, %arg1: memref<1x8x16xf32, #tpu.memory_space<vmem>>, %arg2: memref<48x128xbf16, #tpu.memory_space<vmem>>, %arg3: memref<1x128xf32, #tpu.memory_space<vmem>>, %arg4: memref<64x128xbf16, #tpu.memory_space<vmem>>, %arg5: memref<1x128xf32, #tpu.memory_space<vmem>>, %arg6: memref<2x8x32xf32, #tpu.memory_space<vmem>>, %arg7: memref<2x8x32xf32, #tpu.memory_space<vmem>>) attributes {dimension_semantics = [#tpu.dimension_semantics<arbitrary>], iteration_bounds = array<i64: 8>, scalar_prefetch = 0 : i64, scratch_operands = 0 : i64, tpu.core_type = #tpu.core_type<tc>, window_params = [{transform_indices = @transform_0, window_bounds = array<i64: 1, 8, 16>}, {pipeline_mode = #tpu.pipeline_mode<synchronous>, transform_indices = @transform_1, window_bounds = array<i64: 48, 128>}, {pipeline_mode = #tpu.pipeline_mode<synchronous>, transform_indices = @transform_2, window_bounds = array<i64: 1, 128>}, {pipeline_mode = #tpu.pipeline_mode<synchronous>, transform_indices = @transform_3, window_bounds = array<i64: 64, 128>}, {pipeline_mode = #tpu.pipeline_mode<synchronous>, transform_indices = @transform_4, window_bounds = array<i64: 1, 128>}, {pipeline_mode = #tpu.pipeline_mode<synchronous>, transform_indices = @transform_5, window_bounds = array<i64: 2, 8, 32>}, {pipeline_mode = #tpu.pipeline_mode<synchronous>, transform_indices = @transform_6, window_bounds = array<i64: 2, 8, 32>}]} {
    %c0_i32 = arith.constant 0 : i32
    %0 = arith.cmpi eq, %arg0, %c0_i32 : i32
    %1 = arith.extui %0 : i1 to i32
    %c0_i32_0 = arith.constant 0 : i32
    %2 = arith.cmpi ne, %1, %c0_i32_0 : i32
    scf.if %2 {
      %cst_41 = arith.constant 0.000000e+00 : f32
      %89 = vector.broadcast %cst_41 : f32 to vector<2x8x32xf32>
      %c0_42 = arith.constant 0 : index
      %c0_43 = arith.constant 0 : index
      %c0_44 = arith.constant 0 : index
      %90 = vector.load %arg6[%c0_42, %c0_43, %c0_44] : memref<2x8x32xf32, #tpu.memory_space<vmem>>, vector<2x8x32xf32>
      tpu.vector_store %arg6[%c0_42, %c0_43, %c0_44], %89 {strides = array<i32>} : memref<2x8x32xf32, #tpu.memory_space<vmem>>, vector<2x8x32xf32>,
      %cst_45 = arith.constant 0.000000e+00 : f32
      %91 = vector.broadcast %cst_45 : f32 to vector<2x8x32xf32>
      %c0_46 = arith.constant 0 : index
      %c0_47 = arith.constant 0 : index
      %c0_48 = arith.constant 0 : index
      %92 = vector.load %arg7[%c0_46, %c0_47, %c0_48] : memref<2x8x32xf32, #tpu.memory_space<vmem>>, vector<2x8x32xf32>
      tpu.vector_store %arg7[%c0_46, %c0_47, %c0_48], %91 {strides = array<i32>} : memref<2x8x32xf32, #tpu.memory_space<vmem>>, vector<2x8x32xf32>,
    } else {
    }
    %c0 = arith.constant 0 : index
    %c0_1 = arith.constant 0 : index
    %c0_2 = arith.constant 0 : index
    %3 = vector.load %arg1[%c0, %c0_1, %c0_2] : memref<1x8x16xf32, #tpu.memory_space<vmem>>, vector<1x8x16xf32>
    %4 = vector.shape_cast %3 : vector<1x8x16xf32> to vector<8x16xf32>
    %c0_3 = arith.constant 0 : index
    %c0_4 = arith.constant 0 : index
    %c0_5 = arith.constant 0 : index
    %5 = vector.load %arg6[%c0_3, %c0_4, %c0_5] : memref<2x8x32xf32, #tpu.memory_space<vmem>>, vector<1x8x32xf32>
    %6 = vector.shape_cast %5 : vector<1x8x32xf32> to vector<8x32xf32>
    %c0_6 = arith.constant 0 : index
    %c0_7 = arith.constant 0 : index
    %c0_8 = arith.constant 0 : index
    %7 = vector.load %arg7[%c0_6, %c0_7, %c0_8] : memref<2x8x32xf32, #tpu.memory_space<vmem>>, vector<1x8x32xf32>
    %8 = vector.shape_cast %7 : vector<1x8x32xf32> to vector<8x32xf32>
    %9 = tpu.concatenate %4, %6 in 1 : vector<8x16xf32>, vector<8x32xf32> -> vector<8x48xf32>
    %10 = arith.truncf %9 : vector<8x48xf32> to vector<8x48xbf16>
    %c0_9 = arith.constant 0 : index
    %c0_10 = arith.constant 0 : index
    %11 = vector.load %arg2[%c0_9, %c0_10] : memref<48x128xbf16, #tpu.memory_space<vmem>>, vector<48x128xbf16>
    %cst = arith.constant dense<0.000000e+00> : vector<8x128xf32>
    %12 = tpu.matmul %10, %11, %cst {dimension_numbers = #tpu.dot_dimension_numbers<[1], [0], [0], [1], [0, 0, 1, 1], [], []>} : vector<8x48xbf16>, vector<48x128xbf16>, vector<8x128xf32> -> vector<8x128xf32>
    %c0_11 = arith.constant 0 : index
    %c0_12 = arith.constant 0 : index
    %13 = vector.load %arg3[%c0_11, %c0_12] : memref<1x128xf32, #tpu.memory_space<vmem>>, vector<1x128xf32>
    %14 = vector.broadcast %13 : vector<1x128xf32> to vector<8x128xf32>
    %15 = arith.addf %12, %14 : vector<8x128xf32>
    %16 = vector.extract_strided_slice %15 {offsets = [0, 0], sizes = [8, 32], strides = [1, 1]} : vector<8x128xf32> to vector<8x32xf32>
    %17 = arith.negf %16 : vector<8x32xf32>
    %18 = math.exp %17 : vector<8x32xf32>
    %cst_13 = arith.constant 1.000000e+00 : f32
    %19 = vector.broadcast %cst_13 : f32 to vector<8x32xf32>
    %20 = arith.addf %19, %18 : vector<8x32xf32>
    %21 = arith.divf %19, %20 : vector<8x32xf32>
    %22 = vector.extract_strided_slice %15 {offsets = [0, 32], sizes = [8, 32], strides = [1, 1]} : vector<8x128xf32> to vector<8x32xf32>
    %23 = arith.negf %22 : vector<8x32xf32>
    %24 = math.exp %23 : vector<8x32xf32>
    %cst_14 = arith.constant 1.000000e+00 : f32
    %25 = vector.broadcast %cst_14 : f32 to vector<8x32xf32>
    %26 = arith.addf %25, %24 : vector<8x32xf32>
    %27 = arith.divf %25, %26 : vector<8x32xf32>
    %28 = vector.extract_strided_slice %15 {offsets = [0, 64], sizes = [8, 32], strides = [1, 1]} : vector<8x128xf32> to vector<8x32xf32>
    %29 = math.tanh %28 : vector<8x32xf32>
    %30 = vector.extract_strided_slice %15 {offsets = [0, 96], sizes = [8, 32], strides = [1, 1]} : vector<8x128xf32> to vector<8x32xf32>
    %31 = arith.negf %30 : vector<8x32xf32>
    %32 = math.exp %31 : vector<8x32xf32>
    %cst_15 = arith.constant 1.000000e+00 : f32
    %33 = vector.broadcast %cst_15 : f32 to vector<8x32xf32>
    %34 = arith.addf %33, %32 : vector<8x32xf32>
    %35 = arith.divf %33, %34 : vector<8x32xf32>
    %36 = arith.mulf %27, %8 : vector<8x32xf32>
    %37 = arith.mulf %21, %29 : vector<8x32xf32>
    %38 = arith.addf %36, %37 : vector<8x32xf32>
    %39 = math.tanh %38 : vector<8x32xf32>
    %40 = arith.mulf %35, %39 : vector<8x32xf32>
    %c0_16 = arith.constant 0 : index
    %c0_17 = arith.constant 0 : index
    %c0_18 = arith.constant 0 : index
    %41 = vector.load %arg6[%c0_16, %c0_17, %c0_18] : memref<2x8x32xf32, #tpu.memory_space<vmem>>, vector<1x8x32xf32>
    %42 = vector.shape_cast %41 : vector<1x8x32xf32> to vector<8x32xf32>
    %43 = vector.shape_cast %40 : vector<8x32xf32> to vector<1x8x32xf32>
    tpu.vector_store %arg6[%c0_16, %c0_17, %c0_18], %43 {strides = array<i32>} : memref<2x8x32xf32, #tpu.memory_space<vmem>>, vector<1x8x32xf32>,
    %c0_19 = arith.constant 0 : index
    %c0_20 = arith.constant 0 : index
    %c0_21 = arith.constant 0 : index
    %44 = vector.load %arg7[%c0_19, %c0_20, %c0_21] : memref<2x8x32xf32, #tpu.memory_space<vmem>>, vector<1x8x32xf32>
    %45 = vector.shape_cast %44 : vector<1x8x32xf32> to vector<8x32xf32>
    %46 = vector.shape_cast %38 : vector<8x32xf32> to vector<1x8x32xf32>
    tpu.vector_store %arg7[%c0_19, %c0_20, %c0_21], %46 {strides = array<i32>} : memref<2x8x32xf32, #tpu.memory_space<vmem>>, vector<1x8x32xf32>,
    %c1 = arith.constant 1 : index
    %c0_22 = arith.constant 0 : index
    %c0_23 = arith.constant 0 : index
    %47 = vector.load %arg6[%c1, %c0_22, %c0_23] : memref<2x8x32xf32, #tpu.memory_space<vmem>>, vector<1x8x32xf32>
    %48 = vector.shape_cast %47 : vector<1x8x32xf32> to vector<8x32xf32>
    %c1_24 = arith.constant 1 : index
    %c0_25 = arith.constant 0 : index
    %c0_26 = arith.constant 0 : index
    %49 = vector.load %arg7[%c1_24, %c0_25, %c0_26] : memref<2x8x32xf32, #tpu.memory_space<vmem>>, vector<1x8x32xf32>
    %50 = vector.shape_cast %49 : vector<1x8x32xf32> to vector<8x32xf32>
    %51 = tpu.concatenate %40, %48 in 1 : vector<8x32xf32>, vector<8x32xf32> -> vector<8x64xf32>
    %52 = arith.truncf %51 : vector<8x64xf32> to vector<8x64xbf16>
    %c0_27 = arith.constant 0 : index
    %c0_28 = arith.constant 0 : index
    %53 = vector.load %arg4[%c0_27, %c0_28] : memref<64x128xbf16, #tpu.memory_space<vmem>>, vector<64x128xbf16>
    %cst_29 = arith.constant dense<0.000000e+00> : vector<8x128xf32>
    %54 = tpu.matmul %52, %53, %cst_29 {dimension_numbers = #tpu.dot_dimension_numbers<[1], [0], [0], [1], [0, 0, 1, 1], [], []>} : vector<8x64xbf16>, vector<64x128xbf16>, vector<8x128xf32> -> vector<8x128xf32>
    %c0_30 = arith.constant 0 : index
    %c0_31 = arith.constant 0 : index
    %55 = vector.load %arg5[%c0_30, %c0_31] : memref<1x128xf32, #tpu.memory_space<vmem>>, vector<1x128xf32>
    %56 = vector.broadcast %55 : vector<1x128xf32> to vector<8x128xf32>
    %57 = arith.addf %54, %56 : vector<8x128xf32>
    %58 = vector.extract_strided_slice %57 {offsets = [0, 0], sizes = [8, 32], strides = [1, 1]} : vector<8x128xf32> to vector<8x32xf32>
    %59 = arith.negf %58 : vector<8x32xf32>
    %60 = math.exp %59 : vector<8x32xf32>
    %cst_32 = arith.constant 1.000000e+00 : f32
    %61 = vector.broadcast %cst_32 : f32 to vector<8x32xf32>
    %62 = arith.addf %61, %60 : vector<8x32xf32>
    %63 = arith.divf %61, %62 : vector<8x32xf32>
    %64 = vector.extract_strided_slice %57 {offsets = [0, 32], sizes = [8, 32], strides = [1, 1]} : vector<8x128xf32> to vector<8x32xf32>
    %65 = arith.negf %64 : vector<8x32xf32>
    %66 = math.exp %65 : vector<8x32xf32>
    %cst_33 = arith.constant 1.000000e+00 : f32
    %67 = vector.broadcast %cst_33 : f32 to vector<8x32xf32>
    %68 = arith.addf %67, %66 : vector<8x32xf32>
    %69 = arith.divf %67, %68 : vector<8x32xf32>
    %70 = vector.extract_strided_slice %57 {offsets = [0, 64], sizes = [8, 32], strides = [1, 1]} : vector<8x128xf32> to vector<8x32xf32>
    %71 = math.tanh %70 : vector<8x32xf32>
    %72 = vector.extract_strided_slice %57 {offsets = [0, 96], sizes = [8, 32], strides = [1, 1]} : vector<8x128xf32> to vector<8x32xf32>
    %73 = arith.negf %72 : vector<8x32xf32>
    %74 = math.exp %73 : vector<8x32xf32>
    %cst_34 = arith.constant 1.000000e+00 : f32
    %75 = vector.broadcast %cst_34 : f32 to vector<8x32xf32>
    %76 = arith.addf %75, %74 : vector<8x32xf32>
    %77 = arith.divf %75, %76 : vector<8x32xf32>
    %78 = arith.mulf %69, %50 : vector<8x32xf32>
    %79 = arith.mulf %63, %71 : vector<8x32xf32>
    %80 = arith.addf %78, %79 : vector<8x32xf32>
    %81 = math.tanh %80 : vector<8x32xf32>
    %82 = arith.mulf %77, %81 : vector<8x32xf32>
    %c1_35 = arith.constant 1 : index
    %c0_36 = arith.constant 0 : index
    %c0_37 = arith.constant 0 : index
    %83 = vector.load %arg6[%c1_35, %c0_36, %c0_37] : memref<2x8x32xf32, #tpu.memory_space<vmem>>, vector<1x8x32xf32>
    %84 = vector.shape_cast %83 : vector<1x8x32xf32> to vector<8x32xf32>
    %85 = vector.shape_cast %82 : vector<8x32xf32> to vector<1x8x32xf32>
    tpu.vector_store %arg6[%c1_35, %c0_36, %c0_37], %85 {strides = array<i32>} : memref<2x8x32xf32, #tpu.memory_space<vmem>>, vector<1x8x32xf32>,
    %c1_38 = arith.constant 1 : index
    %c0_39 = arith.constant 0 : index
    %c0_40 = arith.constant 0 : index
    %86 = vector.load %arg7[%c1_38, %c0_39, %c0_40] : memref<2x8x32xf32, #tpu.memory_space<vmem>>, vector<1x8x32xf32>
    %87 = vector.shape_cast %86 : vector<1x8x32xf32> to vector<8x32xf32>
    %88 = vector.shape_cast %80 : vector<8x32xf32> to vector<1x8x32xf32>
    tpu.vector_store %arg7[%c1_38, %c0_39, %c0_40], %88 {strides = array<i32>} : memref<2x8x32xf32, #tpu.memory_space<vmem>>, vector<1x8x32xf32>,
    return
  }
  func.func @transform_0(%arg0: i32) -> (i32, i32, i32) {
    %c0_i32 = arith.constant 0 : i32
    %c0_i32_0 = arith.constant 0 : i32
    %c0_i32_1 = arith.constant 0 : i32
    return %arg0, %c0_i32, %c0_i32_0 : i32, i32, i32
  }
  func.func @transform_1(%arg0: i32) -> (i32, i32) {
    %c0_i32 = arith.constant 0 : i32
    %c0_i32_0 = arith.constant 0 : i32
    %c0_i32_1 = arith.constant 0 : i32
    return %c0_i32, %c0_i32_0 : i32, i32
  }
  func.func @transform_2(%arg0: i32) -> (i32, i32) {
    %c0_i32 = arith.constant 0 : i32
    %c0_i32_0 = arith.constant 0 : i32
    %c0_i32_1 = arith.constant 0 : i32
    return %c0_i32, %c0_i32_0 : i32, i32
  }
  func.func @transform_3(%arg0: i32) -> (i32, i32) {
    %c0_i32 = arith.constant 0 : i32
    %c0_i32_0 = arith.constant 0 : i32
    %c0_i32_1 = arith.constant 0 : i32
    return %c0_i32, %c0_i32_0 : i32, i32
  }
  func.func @transform_4(%arg0: i32) -> (i32, i32) {
    %c0_i32 = arith.constant 0 : i32
    %c0_i32_0 = arith.constant 0 : i32
    %c0_i32_1 = arith.constant 0 : i32
    return %c0_i32, %c0_i32_0 : i32, i32
  }
  func.func @transform_5(%arg0: i32) -> (i32, i32, i32) {
    %c0_i32 = arith.constant 0 : i32
    %c0_i32_0 = arith.constant 0 : i32
    %c0_i32_1 = arith.constant 0 : i32
    %c0_i32_2 = arith.constant 0 : i32
    return %c0_i32, %c0_i32_0, %c0_i32_1 : i32, i32, i32
  }
  func.func @transform_6(%arg0: i32) -> (i32, i32, i32) {
    %c0_i32 = arith.constant 0 : i32
    %c0_i32_0 = arith.constant 0 : i32
    %c0_i32_1 = arith.constant 0 : i32
    %c0_i32_2 = arith.constant 0 : i32
    return %c0_i32, %c0_i32_0, %c0_i32_1 : i32, i32, i32
  }
}

</mosaic_0001>

<bundles_post_ra>
// kernel: _forward_teacher_forced.3
= control target key start
LH: loop header
LB: loop body
LE: loop exit
PB: predicated region body
PF: predicated region fallthrough
CT: control target
= control target key end

     0   :  { %17 = vsyncpa [#allocation3], 0  ;;  %s952_s17 = smov 0   ;;  %s1072_s0 = inlined_call_operand.vmem [shape: f32[7,8,16], index: 0, kind: input, shape index: {}]   ;;  %s1073_s1 = inlined_call_operand.vmem [shape: f32[2,8,32], index: 1, kind: input, shape index: {}]   ;;  %s1074_s2 = inlined_call_operand.vmem [shape: f32[2,8,32], index: 2, kind: input, shape index: {}]   ;;  %s1075_s3 = inlined_call_operand.vmem [shape: bf16[48,128], index: 3, kind: input, shape index: {}]   ;;  %s1076_s4 = inlined_call_operand.vmem [shape: f32[1,128], index: 4, kind: input, shape index: {}]   ;;  %s1077_s5 = inlined_call_operand.vmem [shape: bf16[64,128], index: 5, kind: input, shape index: {}]   ;;  %s1078_s6 = inlined_call_operand.vmem [shape: f32[1,128], index: 6, kind: input, shape index: {}]   ;;  %s1079_s7 = inlined_call_operand.vmem [shape: bf16[32,32], index: 7, kind: input, shape index: {}]   ;;  %s1080_s8 = inlined_call_operand.vmem [shape: f32[1,32], index: 8, kind: input, shape index: {}]   ;;  %s1081_s9 = inlined_call_operand.vmem [shape: f32[7,8,32], index: 9, kind: output, shape index: {0}]   ;;  %s1082_s10 = inlined_call_operand.vmem [shape: f32[2,8,32], index: 10, kind: output, shape index: {1}]   ;;  %s1083_s11 = inlined_call_operand.hbm [shape: f32[2,8,32], index: 11, kind: output, shape index: {2}]  }
   0x1 LB: > { %s958_s18 = sadd.s32 4294967295, %s883_s17   ;;  %p745_p0 = scmp.ge.s32.totalorder %s883_s17, 1  ;;  %s883_s17 = sphi %s952_s17, %s23_s17  }
   0x2   : > { %p332_p1 = scmp.lt.s32.totalorder %s883_s17, 8 }
   0x4   : > { %p333_p2 = pnand %p745_p0, %p332_p1 }
   0x5   : > { %p370_p3 = scmp.lt.s32.totalorder (!%p333_p2), %s958_s18, 6  ;;  %p748_p4 = scmp.ne.s32.totalorder (!%p333_p2), %s958_s18, 0 }
   0x6   : > { %336 = sbr.rel (%p333_p2) target bundleno = 1435 (0x59b), region = 56 }
   0xb   : > { %s371_s19 = scalar_select %p370_p3, %s958_s18, 6 }
   0xc   : > { %382 = sbr.rel (%p748_p4) target bundleno = 22 (0x16), region = 60 }
   0xd   : > { %s746_s20 = sshll.u32 %s371_s19, 3 }
   0xe   : > { %s373_s23 = scalar_lea.vmem %s1072_s0, %s746_s20  ;;  %s970_s26 = scalar_lea.vmem %s1081_s9, %s746_s20 }
  0x11   : > { %v383_v0 = vld [vmem:[%s1073_s1] sm:$0xff]  ;;  %vm385_vm0 = vcmask 261120   ;;  %v384_v1 = vld [vmem:[%s1073_s1 + $0x8] sm:$0xff] }
  0x12   : > { %v388_v2 = vld [vmem:[%s1074_s2] sm:$0xff]  ;;  %386 = vst.msk [vmem:[%s1082_s10] sm:$0xff] %vm385_vm0, %v383_v0  ;;  %v389_v3 = vld [vmem:[%s1074_s2 + $0x8] sm:$0xff] }
  0x13   : > { %387 = vst.msk [vmem:[%s1082_s10 + $0x8] sm:$0xff] %vm385_vm0, %v384_v1 }
  0x14   : > { %390 = vst.msk [vmem:[#allocation2] sm:$0xff] %vm385_vm0, %v388_v2 }
  0x15   : > { %391 = vst.msk [vmem:[#allocation2 + $0x8] sm:$0xff] %vm385_vm0, %v389_v3 }
  0x16 PF: > { %v798_v5 = vld [vmem:[%s1075_s3 + $0x10] sm:$0xff]  ;;  %s885_s28 = smov 16   ;;  %v797_v6 = vld [vmem:[%s1075_s3 + $0x8] sm:$0xff]  ;;  %v796_v7 = vld [vmem:[%s1075_s3] sm:$0xff]  ;;  %s886_s14 = smov 32   ;;  %vm399_vm1 = vcmask 130048  }
  0x17   : > { %439 = vmatpush.bf16.msra.mxu0 %v798_v5  ;;  %v392_v9 = vld [vmem:[%s373_s23] sm:$0xff]  ;;  %vm430_vm2 = vcmask 392192   ;;  %s887_s19 = smov 64   ;;  %v802_v39 = vld [vmem:[%s1077_s5 + $0x18] sm:$0xff]  ;;  %v801_v40 = vld [vmem:[%s1077_s5 + $0x10] sm:$0xff]  ;;  %vm492_vm7 = vcmask 261120  }
  0x18   : > { %v826_v13 = vld [vmem:[%s1076_s4] ss:$0 sm:$0xff]  ;;  %553 = vmatpush.bf16.msra.mxu1 %v802_v39  ;;  %v800_v41 = vld [vmem:[%s1077_s5 + $0x8] sm:$0xff]  ;;  %vm545_vm8 = vcmask 523264   ;;  %s888_s23 = smov 96   ;;  %p809_p5 = scmp.eq.s32.totalorder %s958_s18, 6 }
  0x19   : > { %v393_v4 = vld [vmem:[%s1082_s10] sm:$0xff]  ;;  %s889_s27 = smov [#allocation2]   ;;  %s671_s12 = sshll.u32 %s1083_s11, 4  ;;  %s672_s12 = int_to_ptr.hbm [resolvable:$true] %s671_s12 }
  0x1a   : > { %396 = vrot.lane.b32.xlu0 %v393_v4, %s885_s28  ;;  %v763_v33 = vld [vmem:[%s1082_s10 + $0x8] sm:$0xff]  ;;  %v799_v44 = vld [vmem:[%s1077_s5] sm:$0xff]  ;;  %s669_s28 = sshll.u32 %s889_s27, 4  ;;  %s891_s13 = smov 8   ;;  %s670_s28 = int_to_ptr.vmem [resolvable:$true] %s669_s28 }
  0x1b   : > { %440 = vmatpush.bf16.msra.mxu0 %v797_v6  ;;  %v394_v8 = vld [vmem:[#allocation2] sm:$0xff] }
  0x1c   : > { %468 = vrot.lane.b32.xlu1 %v394_v8, %s886_s14  ;;  %554 = vmatpush.bf16.msra.mxu1 %v801_v40  ;;  %v502_v45 = vld [vmem:[#allocation2 + $0x8] sm:$0xff]  ;;  %v827_v50 = vld [vmem:[%s1078_s6] ss:$0 sm:$0xff] }
  0x1f   : > { %441 = vmatpush.bf16.msra.mxu0 %v796_v7 }
  0x20   : > { %555 = vmatpush.bf16.msra.mxu1 %v800_v41 }
  0x24   : > { %556 = vmatpush.bf16.msra.mxu1 %v799_v44 }
  0x8c   : > { %v397_v10 = vpop.permute.xlu0 %396 }
  0x8d   : > { %v400_v11 = vsel %vm399_vm1, %v392_v9, %v397_v10 }
  0x8e   : > { %v401_v12 = vpack.c.bf16 %v400_v11, %v400_v11  ;;  %v469_v34 = vpop.permute.xlu1 %468 }
  0x90   : > { %761 = vmatmul.msk.bf16.vlgmr.msra.gmra.mxu0 %vm430_vm2, %v401_v12  ;;  %v804_v12 = vld [vmem:[%s1079_s7 + $0x8] sm:$0xff] }
  0x91   : > { %646 = vmatpush.bf16.msra.mxu2 %v804_v12 }
 0x10d   : > { %v443_v14 = vpop.f32.mrf.mxu0 }
 0x10e   : > { %v444_v15 = vadd.f32 %v826_v13, %v443_v14  ;;  %v803_v13 = vld [vmem:[%s1079_s7] sm:$0xff] }
 0x10f   : > { %647 = vmatpush.bf16.msra.mxu2 %v803_v13 }
 0x110   : > { %829 = vtanh.f32 %v444_v15  ;;  %v762_v18 = vmul.f32 -1.442695, %v444_v15 }
 0x112   : > { %831 = vpow2.f32 %v762_v18 }
 0x115   : > { %v445_v16 = vpop.f32.mrf.mxu0 }
 0x116   : > { %v830_v17 = vpop.eup %829 }
 0x117   : > { %473 = vrot.lane.b32.xlu0 %v830_v17, %s887_s19 }
 0x118   : > { %v832_v19 = vpop.eup %831 }
 0x119   : > { %v450_v20 = vadd.f32 1.0, %v832_v19 }
 0x11b   : > { %833 = vrcp.f32 %v450_v20  ;;  %v462_v26 = vand.u32 2147483648, %v450_v20  ;;  %vm456_vm4 = vweird.f32 %v450_v20  ;;  %v460_v27 = vand.u32 2147483647, %v450_v20 }
 0x11d   : > { %v463_v29 = vor.u32 1.1754944e-38, %v462_v26  ;;  %vm461_vm6 = vcmp.eq.f32.partialorder %v460_v27, 8.507059e+37 }
 0x11f   : > { %504 = vrot.lane.b32.xlu0 %v763_v33, %s886_s14 }
 0x121   : > { %v834_v21 = vpop.eup %833 }
 0x122   : > { %v452_v22 = vmul.f32 %v834_v21, %v450_v20  ;;  %vm457_vm3 = vweird.f32 %v834_v21  ;;  %v828_v20 = vld [vmem:[%s1080_s8] ss:$0 sm:$0xff] }
 0x123   : > { %vm458_vm5 = vmor %vm456_vm4, %vm457_vm3 }
 0x124   : > { %v453_v23 = vsub.f32 1.0, %v452_v22 }
 0x126   : > { %v454_v24 = vmul.f32 %v834_v21, %v453_v23 }
 0x128   : > { %v455_v25 = vadd.f32 %v834_v21, %v454_v24 }
 0x12a   : > { %v459_v28 = vsel %vm458_vm5, %v834_v21, %v455_v25 }
 0x12b   : > { %v464_v30 = vsel %vm461_vm6, %v463_v29, %v459_v28 }
 0x12c   : > { %v471_v35 = vmul.f32 %v469_v34, %v464_v30 }
 0x189   : > { %v474_v31 = vpop.permute.xlu0 %473 }
 0x18a   : > { %v476_v32 = vmul.f32 %v474_v31, %v464_v30 }
 0x18c   : > { %478 = vrot.lane.b32.xlu1 %v476_v32, %s886_s14 }
 0x191   : > { %v505_v46 = vpop.permute.xlu0 %504 }
 0x1fe   : > { %v479_v36 = vpop.permute.xlu1 %478 }
 0x1ff   : > { %v481_v37 = vadd.f32 %v479_v36, %v471_v35 }
 0x201   : > { %835 = vtanh.f32 %v481_v37 }
 0x207   : > { %v836_v38 = vpop.eup %835 }
 0x208   : > { %484 = vrot.lane.b32.xlu2 %v836_v38, %s887_s19 }
 0x262   : > { %v485_v42 = vpop.permute.xlu2 %484 }
 0x263   : > { %v487_v43 = vmul.f32 %v485_v42, %v464_v30 }
 0x265   : > { %489 = vrot.lane.b32.xlu2 %v487_v43, %s886_s14 }
 0x26d   : > { %583 = vrot.lane.b32.xlu2 %v502_v45, %s886_s14 }
 0x2bf   : > { %v490_v47 = vpop.permute.xlu2 %489 }
 0x2c0   : > { %493 = vst.msk [vmem:[%s1082_s10] sm:$0xff] %vm492_vm7, %v490_v47  ;;  %v507_v48 = vsel %vm492_vm7, %v490_v47, %v505_v46 }
 0x2c1   : > { %v508_v49 = vpack.c.bf16 %v507_v48, %v507_v48 }
 0x2c3   : > { %780 = vmatmul.msk.bf16.vlgmr.msra.gmra.mxu1 %vm545_vm8, %v508_v49 }
 0x2c7   : > { %v584_v6 = vpop.permute.xlu2 %583 }
 0x340   : > { %v558_v51 = vpop.f32.mrf.mxu1 }
 0x341   : > { %v559_v52 = vadd.f32 %v827_v50, %v558_v51 }
 0x343   : > { %837 = vtanh.f32 %v559_v52  ;;  %v781_v55 = vmul.f32 -1.442695, %v559_v52 }
 0x345   : > { %839 = vpow2.f32 %v781_v55 }
 0x348   : > { %v560_v53 = vpop.f32.mrf.mxu1 }
 0x349   : > { %v838_v54 = vpop.eup %837 }
 0x34a   : > { %588 = vrot.lane.b32.xlu1 %v838_v54, %s887_s19 }
 0x34b   : > { %v840_v56 = vpop.eup %839 }
 0x34c   : > { %v565_v57 = vadd.f32 1.0, %v840_v56 }
 0x34e   : > { %841 = vrcp.f32 %v565_v57  ;;  %v577_v63 = vand.u32 2147483648, %v565_v57  ;;  %vm571_vm10 = vweird.f32 %v565_v57  ;;  %v575_v0 = vand.u32 2147483647, %v565_v57 }
 0x350   : > { %v578_v2 = vor.u32 1.1754944e-38, %v577_v63  ;;  %vm576_vm12 = vcmp.eq.f32.partialorder %v575_v0, 8.507059e+37 }
 0x354   : > { %v842_v58 = vpop.eup %841 }
 0x355   : > { %v567_v59 = vmul.f32 %v842_v58, %v565_v57  ;;  %vm572_vm9 = vweird.f32 %v842_v58 }
 0x356   : > { %vm573_vm11 = vmor %vm571_vm10, %vm572_vm9 }
 0x357   : > { %v568_v60 = vsub.f32 1.0, %v567_v59 }
 0x359   : > { %v569_v61 = vmul.f32 %v842_v58, %v568_v60 }
 0x35b   : > { %v570_v62 = vadd.f32 %v842_v58, %v569_v61 }
 0x35d   : > { %v574_v1 = vsel %vm573_vm11, %v842_v58, %v570_v62 }
 0x35e   : > { %v579_v3 = vsel %vm576_vm12, %v578_v2, %v574_v1 }
 0x35f   : > { %v586_v7 = vmul.f32 %v584_v6, %v579_v3 }
 0x3bc   : > { %v589_v4 = vpop.permute.xlu1 %588 }
 0x3bd   : > { %v591_v5 = vmul.f32 %v589_v4, %v579_v3 }
 0x3bf   : > { %593 = vrot.lane.b32.xlu0 %v591_v5, %s886_s14 }
 0x3c7   : > { %495 = vrot.lane.b32.xlu0 %v481_v37, %s888_s23 }
 0x431   : > { %v594_v8 = vpop.permute.xlu0 %593 }
 0x432   : > { %v596_v9 = vadd.f32 %v594_v8, %v586_v7 }
 0x434   : > { %843 = vtanh.f32 %v596_v9 }
 0x439   : > { %v496_v10 = vpop.permute.xlu0 %495 }
 0x43a   : > { %v844_v11 = vpop.eup %843  ;;  %498 = vst.msk [vmem:[#allocation2] sm:$0xff] %vm492_vm7, %v496_v10 }
 0x43b   : > { %599 = vrot.lane.b32.xlu1 %v844_v11, %s887_s19 }
 0x443   : > { %609 = vrot.lane.b32.xlu1 %v596_v9, %s888_s23 }
 0x4ad   : > { %v600_v14 = vpop.permute.xlu1 %599 }
 0x4ae   : > { %v602_v15 = vmul.f32 %v600_v14, %v579_v3 }
 0x4b0   : > { %v613_v16 = vpack.c.bf16 %v602_v15, %v602_v15 }
 0x4b2   : > { %623 = vrot.lane.b32.xlu2 %v613_v16, %s886_s14 }
 0x4b5   : > { %v610_v17 = vpop.permute.xlu1 %609 }
 0x4b6   : > { %612 = vst.msk [vmem:[#allocation2 + $0x8] sm:$0xff] %vm492_vm7, %v610_v17 }
 0x4ba   : > { %604 = vrot.lane.b32.xlu2 %v602_v15, %s886_s14  ;;  %s890_s14 = smov 128  }
 0x4bb   : > { %806 = dma.vmem_to_hbm [thread:$0]  (%p809_p5), %s670_s28, 256, %s672_s12, [#allocation3], %s890_s14, %s890_s14, %s891_s13  }
 0x50c   : > { %v624_v18 = vpop.permute.xlu2 %623 }
 0x50d   : > { %791 = vmatmul.msk.bf16.vlgmr.msra.gmra.mxu2 %vm492_vm7, %v624_v18 }
 0x514   : > { %v605_v19 = vpop.permute.xlu2 %604 }
 0x515   : > { %782 = vst.msk [vmem:[%s1082_s10 + $0x8] sm:$0xff] %vm492_vm7, %v605_v19 }
 0x590   : > { %v649_v21 = vpop.f32.mrf.mxu2 }
 0x591   : > { %v650_v22 = vadd.f32 %v828_v20, %v649_v21 }
 0x593   : > { %653 = vst.msk [vmem:[%s970_s26] sm:$0xff] %vm492_vm7, %v650_v22 }
 0x598   : > { %v651_v23 = vpop.f32.mrf.mxu2 }
 0x599   : > { %878 = dma.done.wait (%p809_p5), [#allocation3], 256  }
 0x59a   : > { %880 = vsyncadd (%p809_p5), [#allocation3], 4294967040 }
 0x59b PF: > { %s23_s17 = sadd.s32 1, %s883_s17  }
 0x59c   : > { %p20_p6 = scmp.ge.s32.totalorder %s23_s17, 9  }
 0x59e   :  { %22 = sbr.rel (!%p20_p6) target bundleno = 1 (0x1), region = 109 }
 0x5a3   :  { %698 = vsyncpa [#allocation3], 1 }
 0x5a4   :  { %700 = vsyncpa [#allocation3 + $0x1], 1 }

// kernel: _forward_teacher_forced.2
= control target key start
LH: loop header
LB: loop body
LE: loop exit
PB: predicated region body
PF: predicated region fallthrough
CT: control target
= control target key end

     0   :  { %s627_s21 = smov 0   ;;  %s722_s0 = inlined_call_operand.vmem [shape: f32[8,8,16], index: 0, kind: input, shape index: {}]   ;;  %s723_s1 = inlined_call_operand.vmem [shape: bf16[48,128], index: 1, kind: input, shape index: {}]   ;;  %s724_s2 = inlined_call_operand.vmem [shape: f32[1,128], index: 2, kind: input, shape index: {}]   ;;  %s725_s3 = inlined_call_operand.vmem [shape: bf16[64,128], index: 3, kind: input, shape index: {}]   ;;  %s726_s4 = inlined_call_operand.vmem [shape: f32[1,128], index: 4, kind: input, shape index: {}]   ;;  %s727_s5 = inlined_call_operand.vmem [shape: f32[2,8,32], index: 5, kind: output, shape index: {0}]   ;;  %s728_s6 = inlined_call_operand.vmem [shape: f32[2,8,32], index: 6, kind: output, shape index: {1}]  }
   0x1 LB: > { %s497_s22 = sadd.s32 4294967295, %s585_s21   ;;  %p500_p0 = scmp.ge.s32.totalorder %s585_s21, 1  ;;  %s585_s21 = sphi %s627_s21, %s17_s21  }
   0x2   : > { %p204_p1 = scmp.lt.s32.totalorder %s585_s21, 9 }
   0x4   : > { %p205_p2 = pnand %p500_p0, %p204_p1 }
   0x5   : > { %p228_p3 = scmp.lt.s32.totalorder (!%p205_p2), %s497_s22, 7  ;;  %p502_p4 = scmp.ne.s32.totalorder (!%p205_p2), %s497_s22, 0 }
   0x6   : > { %208 = sbr.rel (%p205_p2) target bundleno = 1316 (0x524), region = 40 }
   0xb   : > { %s229_s23 = scalar_select %p228_p3, %s497_s22, 7 }
   0xc   : > { %236 = sbr.rel (%p502_p4) target bundleno = 22 (0x16), region = 44 }
   0xd   : > { %s501_s24 = sshll.u32 %s229_s23, 3 }
   0xe   : > { %s231_s27 = scalar_lea.vmem %s722_s0, %s501_s24 }
  0x11   : > { %vm237_vm0 = vcmask 261120   ;;  %v587_v0 = vmov 0.0  }
  0x12   : > { %238 = vst.msk [vmem:[%s727_s5] sm:$0xff] %vm237_vm0, %v587_v0 }
  0x13   : > { %239 = vst.msk [vmem:[%s727_s5 + $0x8] sm:$0xff] %vm237_vm0, %v587_v0 }
  0x14   : > { %240 = vst.msk [vmem:[%s728_s6] sm:$0xff] %vm237_vm0, %v587_v0 }
  0x15   : > { %241 = vst.msk [vmem:[%s728_s6 + $0x8] sm:$0xff] %vm237_vm0, %v587_v0 }
  0x16 PF: > { %v543_v2 = vld [vmem:[%s723_s1 + $0x10] sm:$0xff]  ;;  %s588_s16 = smov 16   ;;  %v542_v3 = vld [vmem:[%s723_s1 + $0x8] sm:$0xff]  ;;  %v541_v4 = vld [vmem:[%s723_s1] sm:$0xff]  ;;  %s589_s24 = smov 32   ;;  %vm249_vm1 = vcmask 130048  }
  0x17   : > { %289 = vmatpush.bf16.msra.mxu0 %v543_v2  ;;  %v242_v6 = vld [vmem:[%s231_s27] sm:$0xff]  ;;  %vm280_vm2 = vcmask 392192   ;;  %s590_s28 = smov 64   ;;  %v547_v36 = vld [vmem:[%s725_s3 + $0x18] sm:$0xff]  ;;  %v546_v37 = vld [vmem:[%s725_s3 + $0x10] sm:$0xff]  ;;  %s591_s14 = smov 96  }
  0x18   : > { %v561_v10 = vld [vmem:[%s724_s2] ss:$0 sm:$0xff]  ;;  %403 = vmatpush.bf16.msra.mxu1 %v547_v36  ;;  %v545_v38 = vld [vmem:[%s725_s3 + $0x8] sm:$0xff]  ;;  %vm342_vm7 = vcmask 261120   ;;  %vm395_vm8 = vcmask 523264  }
  0x19   : > { %v243_v1 = vld [vmem:[%s727_s5] sm:$0xff] }
  0x1a   : > { %246 = vrot.lane.b32.xlu0 %v243_v1, %s588_s16  ;;  %v517_v30 = vld [vmem:[%s727_s5 + $0x8] sm:$0xff]  ;;  %v544_v42 = vld [vmem:[%s725_s3] sm:$0xff] }
  0x1b   : > { %290 = vmatpush.bf16.msra.mxu0 %v542_v3  ;;  %v244_v5 = vld [vmem:[%s728_s6] sm:$0xff] }
  0x1c   : > { %318 = vrot.lane.b32.xlu1 %v244_v5, %s589_s24  ;;  %404 = vmatpush.bf16.msra.mxu1 %v546_v37  ;;  %v518_v41 = vld [vmem:[%s728_s6 + $0x8] sm:$0xff]  ;;  %v562_v49 = vld [vmem:[%s726_s4] ss:$0 sm:$0xff] }
  0x1f   : > { %291 = vmatpush.bf16.msra.mxu0 %v541_v4 }
  0x20   : > { %405 = vmatpush.bf16.msra.mxu1 %v545_v38 }
  0x24   : > { %406 = vmatpush.bf16.msra.mxu1 %v544_v42 }
  0x8c   : > { %v247_v7 = vpop.permute.xlu0 %246 }
  0x8d   : > { %v250_v8 = vsel %vm249_vm1, %v242_v6, %v247_v7 }
  0x8e   : > { %v251_v9 = vpack.c.bf16 %v250_v8, %v250_v8  ;;  %v319_v31 = vpop.permute.xlu1 %318 }
  0x90   : > { %515 = vmatmul.msk.bf16.vlgmr.msra.gmra.mxu0 %vm280_vm2, %v251_v9 }
 0x10d   : > { %v293_v11 = vpop.f32.mrf.mxu0 }
 0x10e   : > { %v294_v12 = vadd.f32 %v561_v10, %v293_v11 }
 0x110   : > { %563 = vtanh.f32 %v294_v12  ;;  %v516_v15 = vmul.f32 -1.442695, %v294_v12 }
 0x112   : > { %565 = vpow2.f32 %v516_v15 }
 0x115   : > { %v295_v13 = vpop.f32.mrf.mxu0 }
 0x116   : > { %v564_v14 = vpop.eup %563 }
 0x117   : > { %323 = vrot.lane.b32.xlu0 %v564_v14, %s590_s28 }
 0x118   : > { %v566_v16 = vpop.eup %565 }
 0x119   : > { %v300_v17 = vadd.f32 1.0, %v566_v16 }
 0x11b   : > { %567 = vrcp.f32 %v300_v17  ;;  %v312_v23 = vand.u32 2147483648, %v300_v17  ;;  %vm306_vm4 = vweird.f32 %v300_v17  ;;  %v310_v24 = vand.u32 2147483647, %v300_v17 }
 0x11d   : > { %v313_v26 = vor.u32 1.1754944e-38, %v312_v23  ;;  %vm311_vm6 = vcmp.eq.f32.partialorder %v310_v24, 8.507059e+37 }
 0x11f   : > { %354 = vrot.lane.b32.xlu0 %v517_v30, %s589_s24 }
 0x121   : > { %v568_v18 = vpop.eup %567 }
 0x122   : > { %v302_v19 = vmul.f32 %v568_v18, %v300_v17  ;;  %vm307_vm3 = vweird.f32 %v568_v18 }
 0x123   : > { %vm308_vm5 = vmor %vm306_vm4, %vm307_vm3 }
 0x124   : > { %v303_v20 = vsub.f32 1.0, %v302_v19 }
 0x126   : > { %v304_v21 = vmul.f32 %v568_v18, %v303_v20 }
 0x128   : > { %v305_v22 = vadd.f32 %v568_v18, %v304_v21 }
 0x12a   : > { %v309_v25 = vsel %vm308_vm5, %v568_v18, %v305_v22 }
 0x12b   : > { %v314_v27 = vsel %vm311_vm6, %v313_v26, %v309_v25 }
 0x12c   : > { %v321_v32 = vmul.f32 %v319_v31, %v314_v27 }
 0x189   : > { %v324_v28 = vpop.permute.xlu0 %323 }
 0x18a   : > { %v326_v29 = vmul.f32 %v324_v28, %v314_v27 }
 0x18c   : > { %328 = vrot.lane.b32.xlu1 %v326_v29, %s589_s24 }
 0x191   : > { %v355_v43 = vpop.permute.xlu0 %354 }
 0x1fe   : > { %v329_v33 = vpop.permute.xlu1 %328 }
 0x1ff   : > { %v331_v34 = vadd.f32 %v329_v33, %v321_v32 }
 0x201   : > { %569 = vtanh.f32 %v331_v34 }
 0x207   : > { %v570_v35 = vpop.eup %569 }
 0x208   : > { %334 = vrot.lane.b32.xlu2 %v570_v35, %s590_s28 }
 0x262   : > { %v335_v39 = vpop.permute.xlu2 %334 }
 0x263   : > { %v337_v40 = vmul.f32 %v335_v39, %v314_v27 }
 0x265   : > { %339 = vrot.lane.b32.xlu2 %v337_v40, %s589_s24 }
 0x26d   : > { %433 = vrot.lane.b32.xlu2 %v518_v41, %s589_s24 }
 0x275   : > { %345 = vrot.lane.b32.xlu2 %v331_v34, %s591_s14 }
 0x2bf   : > { %v340_v44 = vpop.permute.xlu2 %339 }
 0x2c0   : > { %343 = vst.msk [vmem:[%s727_s5] sm:$0xff] %vm342_vm7, %v340_v44  ;;  %v357_v45 = vsel %vm342_vm7, %v340_v44, %v355_v43 }
 0x2c1   : > { %v358_v46 = vpack.c.bf16 %v357_v45, %v357_v45 }
 0x2c3   : > { %535 = vmatmul.msk.bf16.vlgmr.msra.gmra.mxu1 %vm395_vm8, %v358_v46 }
 0x2c7   : > { %v434_v47 = vpop.permute.xlu2 %433 }
 0x2cf   : > { %v346_v48 = vpop.permute.xlu2 %345 }
 0x2d0   : > { %348 = vst.msk [vmem:[%s728_s6] sm:$0xff] %vm342_vm7, %v346_v48 }
 0x340   : > { %v408_v50 = vpop.f32.mrf.mxu1 }
 0x341   : > { %v409_v51 = vadd.f32 %v562_v49, %v408_v50 }
 0x343   : > { %571 = vtanh.f32 %v409_v51  ;;  %v536_v54 = vmul.f32 -1.442695, %v409_v51 }
 0x345   : > { %573 = vpow2.f32 %v536_v54 }
 0x348   : > { %v410_v52 = vpop.f32.mrf.mxu1 }
 0x349   : > { %v572_v53 = vpop.eup %571 }
 0x34a   : > { %438 = vrot.lane.b32.xlu1 %v572_v53, %s590_s28 }
 0x34b   : > { %v574_v55 = vpop.eup %573 }
 0x34c   : > { %v415_v56 = vadd.f32 1.0, %v574_v55 }
 0x34e   : > { %575 = vrcp.f32 %v415_v56  ;;  %v427_v62 = vand.u32 2147483648, %v415_v56  ;;  %vm421_vm10 = vweird.f32 %v415_v56  ;;  %v425_v63 = vand.u32 2147483647, %v415_v56 }
 0x350   : > { %v428_v1 = vor.u32 1.1754944e-38, %v427_v62  ;;  %vm426_vm12 = vcmp.eq.f32.partialorder %v425_v63, 8.507059e+37 }
 0x354   : > { %v576_v57 = vpop.eup %575 }
 0x355   : > { %v417_v58 = vmul.f32 %v576_v57, %v415_v56  ;;  %vm422_vm9 = vweird.f32 %v576_v57 }
 0x356   : > { %vm423_vm11 = vmor %vm421_vm10, %vm422_vm9 }
 0x357   : > { %v418_v59 = vsub.f32 1.0, %v417_v58 }
 0x359   : > { %v419_v60 = vmul.f32 %v576_v57, %v418_v59 }
 0x35b   : > { %v420_v61 = vadd.f32 %v576_v57, %v419_v60 }
 0x35d   : > { %v424_v0 = vsel %vm423_vm11, %v576_v57, %v420_v61 }
 0x35e   : > { %v429_v3 = vsel %vm426_vm12, %v428_v1, %v424_v0 }
 0x35f   : > { %v436_v5 = vmul.f32 %v434_v47, %v429_v3 }
 0x3bc   : > { %v439_v2 = vpop.permute.xlu1 %438 }
 0x3bd   : > { %v441_v4 = vmul.f32 %v439_v2, %v429_v3 }
 0x3bf   : > { %443 = vrot.lane.b32.xlu0 %v441_v4, %s589_s24 }
 0x431   : > { %v444_v6 = vpop.permute.xlu0 %443 }
 0x432   : > { %v446_v7 = vadd.f32 %v444_v6, %v436_v5 }
 0x434   : > { %577 = vtanh.f32 %v446_v7 }
 0x43a   : > { %v578_v8 = vpop.eup %577 }
 0x43b   : > { %449 = vrot.lane.b32.xlu1 %v578_v8, %s590_s28 }
 0x443   : > { %459 = vrot.lane.b32.xlu1 %v446_v7, %s591_s14 }
 0x4ad   : > { %v450_v9 = vpop.permute.xlu1 %449 }
 0x4ae   : > { %v452_v10 = vmul.f32 %v450_v9, %v429_v3 }
 0x4b0   : > { %454 = vrot.lane.b32.xlu0 %v452_v10, %s589_s24 }
 0x4b5   : > { %v460_v11 = vpop.permute.xlu1 %459 }
 0x4b6   : > { %538 = vst.msk [vmem:[%s728_s6 + $0x8] sm:$0xff] %vm342_vm7, %v460_v11 }
 0x522   : > { %v455_v12 = vpop.permute.xlu0 %454 }
 0x523   : > { %537 = vst.msk [vmem:[%s727_s5 + $0x8] sm:$0xff] %vm342_vm7, %v455_v12 }
 0x524 PF: > { %s17_s21 = sadd.s32 1, %s585_s21  }
 0x525   : > { %p14_p5 = scmp.ge.s32.totalorder %s17_s21, 10  }
 0x527   :  { %16 = sbr.rel (!%p14_p5) target bundleno = 1 (0x1), region = 80 }

</bundles_post_ra>
